<compile_context>
chip_gen: v7x
topology: tpu7x:2x2x1
jax: 0.10.0
libtpu: 0.0.40
codegen_flags: <defaults>
</compile_context>

<pallas_src>
import jax
import jax.numpy as jnp
from jax.experimental import pallas as pl
from jax.experimental.pallas import tpu as pltpu

LN_EPS = 1e-5  # nn.LayerNorm default


def head_kernel(x_ref, gamma_ref, beta_ref, w_ref, b_ref, out_ref):
    # x_ref: (BT, N, C) batch tile of backbone token features (bf16 or f32).
    bt, n_tokens, _ = x_ref.shape

    # global_pool=True branch: mean over the token dimension, computed on the
    # MXU as a batched (1,N) @ (N,C) contraction with f32 accumulation.
    # No full-tile f32 upcast, no sublane-axis reduce on the VPU/XLU.
    ones_row = jnp.ones((bt, 1, n_tokens), dtype=x_ref.dtype)
    pooled = jnp.einsum(
        "bkn,bnc->bkc", ones_row, x_ref[...],
        preferred_element_type=jnp.float32)[:, 0, :]          # (BT, C) f32
    pooled = pooled * (1.0 / n_tokens)

    # LayerNorm over the feature dim (biased variance, matching nn.LayerNorm).
    mu = jnp.mean(pooled, axis=-1, keepdims=True)
    var = jnp.mean(jnp.square(pooled - mu), axis=-1, keepdims=True)
    y = (pooled - mu) * jax.lax.rsqrt(var + LN_EPS)
    y = y * gamma_ref[...] + beta_ref[...]                     # (BT, C) f32

    # Linear classifier: bf16 operands on the MXU, f32 accumulation.
    logits = jnp.dot(y.astype(w_ref.dtype), w_ref[...],
                     preferred_element_type=jnp.float32)
    out_ref[...] = (logits + b_ref[...]).astype(out_ref.dtype)


def _round_up(v, m):
    return (v + m - 1) // m * m


def adaptformerm_head(x, gamma, beta, w_t, b, *, batch_tile=32):
    """AdaptFormerm head.

    x:     (B, N, C) backbone token features (bf16 recommended)
    gamma: (1, C)  LayerNorm weight (f32)
    beta:  (1, C)  LayerNorm bias   (f32)
    w_t:   (C, K)  classifier weight, transposed (cast to bf16 here)
    b:     (1, K)  classifier bias  (f32)
    returns (B, K) float32 logits
    """
    B, N, C = x.shape
    K = w_t.shape[1]

    # bf16 classifier weights: MXU-native everywhere, half the VMEM/HBM cost.
    w_t = w_t.astype(jnp.bfloat16)

    # Lane-dense output: pad K up to a multiple of 128 (unmasked stores).
    K_pad = _round_up(max(K, 1), 128)
    if K_pad != K:
        w_t = jnp.pad(w_t, ((0, 0), (0, K_pad - K)))
        b = jnp.pad(b, ((0, 0), (0, K_pad - K)))

    # Batch tile: double-buffered bf16 x tiles must fit the generation's VMEM
    # (v7x: 64 MiB, keep batch_tile <= ~32-40; v5e/v6e: 128 MiB, 64 is fine).
    BT = min(B, batch_tile)
    if BT < B:
        BT = max(8, (BT // 8) * 8)  # keep output second-to-last dim 8-aligned
    grid = (pl.cdiv(B, BT),)

    # Scoped-VMEM budget: double-buffered x/out tiles + double-buffered
    # resident params + small f32 temporaries (pooled/normed/y, logits) and
    # headroom for Mosaic internal scratch. No large f32 intermediate anymore.
    x_tile_bytes = BT * N * C * jnp.dtype(x.dtype).itemsize
    out_tile_bytes = BT * K_pad * 4
    param_bytes = C * K_pad * 2 + 2 * C * 4 + K_pad * 4
    temp_bytes = 6 * BT * C * 4 + 2 * BT * K_pad * 4
    vmem_limit = int(min(2 * (x_tile_bytes + out_tile_bytes)
                         + 2 * param_bytes + temp_bytes + (8 << 20),
                         128 << 20))  # NOTE: on v7x keep batch_tile small
                                      # enough that this stays <= 64 MiB.

    out = pl.pallas_call(
        head_kernel,
        out_shape=jax.ShapeDtypeStruct((B, K_pad), jnp.float32),
        grid=grid,
        in_specs=[
            pl.BlockSpec((BT, N, C), lambda i: (i, 0, 0)),   # x: tiled on batch
            pl.BlockSpec((1, C), lambda i: (0, 0)),          # gamma: resident
            pl.BlockSpec((1, C), lambda i: (0, 0)),          # beta: resident
            pl.BlockSpec((C, K_pad), lambda i: (0, 0)),      # w_t: resident
            pl.BlockSpec((1, K_pad), lambda i: (0, 0)),      # b: resident
        ],
        out_specs=pl.BlockSpec((BT, K_pad), lambda i: (i, 0)),
        compiler_params=pltpu.CompilerParams(
            dimension_semantics=("parallel",),  # shard batch tiles across TCs
            vmem_limit_bytes=vmem_limit,
        ),
    )(x, gamma, beta, w_t, b)
    return out[:, :K]


if __name__ == "__main__":
    # Small synthetic shapes consistent with the module's forward:
    # backbone features x: (batch=2, tokens=8, num_features=32), num_classes=16
    B, N, C, K = 2, 8, 32, 16

    key = jax.random.PRNGKey(0)
    kx, kw, kb = jax.random.split(key, 3)

    # Feed activations in bf16 (halves HBM traffic of the only large operand).
    x = jax.random.normal(kx, (B, N, C), dtype=jnp.float32).astype(jnp.bfloat16)

    # Deterministic parameter init (synthetic, not a checkpoint load).
    gamma = jnp.ones((1, C), dtype=jnp.float32)                      # LN weight
    beta = jnp.zeros((1, C), dtype=jnp.float32)                      # LN bias
    w_t = jax.random.normal(kw, (C, K), dtype=jnp.float32) * 0.02    # Linear.weight.T
    b = jax.random.normal(kb, (1, K), dtype=jnp.float32) * 0.02      # Linear.bias

    out = adaptformerm_head(x, gamma, beta, w_t, b)
    out = jax.block_until_ready(out)

    # Pure-JAX reference mirroring the kernel's precision path
    # (bf16 inputs, f32-accumulated pooling, bf16 classifier operands).
    x32 = x.astype(jnp.float32)
    pooled = x32.sum(axis=1) * (1.0 / N)
    mu = pooled.mean(axis=-1, keepdims=True)
    var = ((pooled - mu) ** 2).mean(axis=-1, keepdims=True)
    y = ((pooled - mu) * jax.lax.rsqrt(var + LN_EPS)) * gamma + beta
    ref = (y.astype(jnp.bfloat16).astype(jnp.float32)
           @ w_t.astype(jnp.bfloat16).astype(jnp.float32) + b)

    assert out.shape == (B, K)
    err = float(jnp.max(jnp.abs(out - ref)))
    assert jnp.allclose(out, ref, atol=1e-3, rtol=1e-3), err

    print("KERNEL_OK")
</pallas_src>

<mosaic_0001>
module attributes {stable_mosaic.version = 11 : i64} {
  func.func @head_kernel(%arg0: i32, %arg1: memref<2x8x32xbf16, #tpu.memory_space<vmem>>, %arg2: memref<1x32xf32, #tpu.memory_space<vmem>>, %arg3: memref<1x32xf32, #tpu.memory_space<vmem>>, %arg4: memref<32x128xbf16, #tpu.memory_space<vmem>>, %arg5: memref<1x128xf32, #tpu.memory_space<vmem>>, %arg6: memref<2x128xf32, #tpu.memory_space<vmem>>) attributes {dimension_semantics = [#tpu.dimension_semantics<parallel>], iteration_bounds = array<i64: 1>, scalar_prefetch = 0 : i64, scratch_operands = 0 : i64, tpu.core_type = #tpu.core_type<tc>, window_params = [{transform_indices = @transform_0, window_bounds = array<i64: 2, 8, 32>}, {pipeline_mode = #tpu.pipeline_mode<synchronous>, transform_indices = @transform_1, window_bounds = array<i64: 1, 32>}, {pipeline_mode = #tpu.pipeline_mode<synchronous>, transform_indices = @transform_2, window_bounds = array<i64: 1, 32>}, {pipeline_mode = #tpu.pipeline_mode<synchronous>, transform_indices = @transform_3, window_bounds = array<i64: 32, 128>}, {pipeline_mode = #tpu.pipeline_mode<synchronous>, transform_indices = @transform_4, window_bounds = array<i64: 1, 128>}, {transform_indices = @transform_5, window_bounds = array<i64: 2, 128>}]} {
    %cst = arith.constant 1.000000e+00 : bf16
    %0 = vector.broadcast %cst : bf16 to vector<2x1x8xbf16>
    %c0 = arith.constant 0 : index
    %c0_0 = arith.constant 0 : index
    %c0_1 = arith.constant 0 : index
    %1 = vector.load %arg1[%c0, %c0_0, %c0_1] : memref<2x8x32xbf16, #tpu.memory_space<vmem>>, vector<2x8x32xbf16>
    "tpu.trace_start"() <{level = 10 : i32, message = "bkn,bnc->bkc"}> : () -> ()
    %cst_2 = arith.constant dense<0.000000e+00> : vector<2x1x32xf32>
    %2 = tpu.matmul %0, %1, %cst_2 {dimension_numbers = #tpu.dot_dimension_numbers<[2], [1], [1], [2], [0, 0, 0, 1, 1, 2], [0], [0]>} : vector<2x1x8xbf16>, vector<2x8x32xbf16>, vector<2x1x32xf32> -> vector<2x1x32xf32>
    "tpu.trace_stop"() : () -> ()
    %3 = vector.shape_cast %2 : vector<2x1x32xf32> to vector<2x32xf32>
    %cst_3 = arith.constant 1.250000e-01 : f32
    %4 = vector.broadcast %cst_3 : f32 to vector<2x32xf32>
    %5 = arith.mulf %3, %4 : vector<2x32xf32>
    %cst_4 = arith.constant dense<0.000000e+00> : vector<2xf32>
    %6 = vector.multi_reduction <add>, %5, %cst_4 [1] : vector<2x32xf32> to vector<2xf32>
    %7 = vector.shape_cast %6 : vector<2xf32> to vector<2x1xf32>
    %cst_5 = arith.constant 3.200000e+01 : f32
    %8 = vector.broadcast %cst_5 : f32 to vector<2x1xf32>
    %9 = arith.divf %7, %8 : vector<2x1xf32>
    %10 = vector.broadcast %9 : vector<2x1xf32> to vector<2x32xf32>
    %11 = arith.subf %5, %10 : vector<2x32xf32>
    %12 = arith.mulf %11, %11 : vector<2x32xf32>
    %cst_6 = arith.constant dense<0.000000e+00> : vector<2xf32>
    %13 = vector.multi_reduction <add>, %12, %cst_6 [1] : vector<2x32xf32> to vector<2xf32>
    %14 = vector.shape_cast %13 : vector<2xf32> to vector<2x1xf32>
    %cst_7 = arith.constant 3.200000e+01 : f32
    %15 = vector.broadcast %cst_7 : f32 to vector<2x1xf32>
    %16 = arith.divf %14, %15 : vector<2x1xf32>
    %17 = vector.broadcast %9 : vector<2x1xf32> to vector<2x32xf32>
    %18 = arith.subf %5, %17 : vector<2x32xf32>
    %cst_8 = arith.constant 9.99999974E-6 : f32
    %19 = vector.broadcast %cst_8 : f32 to vector<2x1xf32>
    %20 = arith.addf %16, %19 : vector<2x1xf32>
    %21 = math.rsqrt %20 : vector<2x1xf32>
    %22 = vector.broadcast %21 : vector<2x1xf32> to vector<2x32xf32>
    %23 = arith.mulf %18, %22 : vector<2x32xf32>
    %c0_9 = arith.constant 0 : index
    %c0_10 = arith.constant 0 : index
    %24 = vector.load %arg2[%c0_9, %c0_10] : memref<1x32xf32, #tpu.memory_space<vmem>>, vector<1x32xf32>
    %25 = vector.broadcast %24 : vector<1x32xf32> to vector<2x32xf32>
    %26 = arith.mulf %23, %25 : vector<2x32xf32>
    %c0_11 = arith.constant 0 : index
    %c0_12 = arith.constant 0 : index
    %27 = vector.load %arg3[%c0_11, %c0_12] : memref<1x32xf32, #tpu.memory_space<vmem>>, vector<1x32xf32>
    %28 = vector.broadcast %27 : vector<1x32xf32> to vector<2x32xf32>
    %29 = arith.addf %26, %28 : vector<2x32xf32>
    %30 = arith.truncf %29 : vector<2x32xf32> to vector<2x32xbf16>
    %c0_13 = arith.constant 0 : index
    %c0_14 = arith.constant 0 : index
    %31 = vector.load %arg4[%c0_13, %c0_14] : memref<32x128xbf16, #tpu.memory_space<vmem>>, vector<32x128xbf16>
    %cst_15 = arith.constant dense<0.000000e+00> : vector<2x128xf32>
    %32 = tpu.matmul %30, %31, %cst_15 {dimension_numbers = #tpu.dot_dimension_numbers<[1], [0], [0], [1], [0, 0, 1, 1], [], []>} : vector<2x32xbf16>, vector<32x128xbf16>, vector<2x128xf32> -> vector<2x128xf32>
    %c0_16 = arith.constant 0 : index
    %c0_17 = arith.constant 0 : index
    %33 = vector.load %arg5[%c0_16, %c0_17] : memref<1x128xf32, #tpu.memory_space<vmem>>, vector<1x128xf32>
    %34 = vector.broadcast %33 : vector<1x128xf32> to vector<2x128xf32>
    %35 = arith.addf %32, %34 : vector<2x128xf32>
    %c0_18 = arith.constant 0 : index
    %c0_19 = arith.constant 0 : index
    %36 = vector.load %arg6[%c0_18, %c0_19] : memref<2x128xf32, #tpu.memory_space<vmem>>, vector<2x128xf32>
    tpu.vector_store %arg6[%c0_18, %c0_19], %35 {strides = array<i32>} : memref<2x128xf32, #tpu.memory_space<vmem>>, vector<2x128xf32>,
    return
  }
  func.func @transform_0(%arg0: i32) -> (i32, i32, i32) {
    %c0_i32 = arith.constant 0 : i32
    %c0_i32_0 = arith.constant 0 : i32
    %c0_i32_1 = arith.constant 0 : i32
    return %arg0, %c0_i32, %c0_i32_0 : i32, i32, i32
  }
  func.func @transform_1(%arg0: i32) -> (i32, i32) {
    %c0_i32 = arith.constant 0 : i32
    %c0_i32_0 = arith.constant 0 : i32
    %c0_i32_1 = arith.constant 0 : i32
    return %c0_i32, %c0_i32_0 : i32, i32
  }
  func.func @transform_2(%arg0: i32) -> (i32, i32) {
    %c0_i32 = arith.constant 0 : i32
    %c0_i32_0 = arith.constant 0 : i32
    %c0_i32_1 = arith.constant 0 : i32
    return %c0_i32, %c0_i32_0 : i32, i32
  }
  func.func @transform_3(%arg0: i32) -> (i32, i32) {
    %c0_i32 = arith.constant 0 : i32
    %c0_i32_0 = arith.constant 0 : i32
    %c0_i32_1 = arith.constant 0 : i32
    return %c0_i32, %c0_i32_0 : i32, i32
  }
  func.func @transform_4(%arg0: i32) -> (i32, i32) {
    %c0_i32 = arith.constant 0 : i32
    %c0_i32_0 = arith.constant 0 : i32
    %c0_i32_1 = arith.constant 0 : i32
    return %c0_i32, %c0_i32_0 : i32, i32
  }
  func.func @transform_5(%arg0: i32) -> (i32, i32) {
    %c0_i32 = arith.constant 0 : i32
    %c0_i32_0 = arith.constant 0 : i32
    return %arg0, %c0_i32 : i32, i32
  }
}

</mosaic_0001>

<bundles_post_ra>
// kernel: tpu_custom_call.1
= control target key start
LH: loop header
LB: loop body
LE: loop exit
PB: predicated region body
PF: predicated region fallthrough
CT: control target
= control target key end

     0   :  { %10 = vsyncpa [#allocation3], 0  ;;  %s499_s0 = inlined_call_operand.hbm [shape: bf16[2,8,32], index: 0, kind: input, shape index: {}]   ;;  %s500_s1 = inlined_call_operand.vmem [shape: f32[1,32], index: 1, kind: input, shape index: {}]   ;;  %s501_s2 = inlined_call_operand.vmem [shape: f32[1,32], index: 2, kind: input, shape index: {}]   ;;  %s502_s3 = inlined_call_operand.hbm [shape: bf16[32,128], index: 3, kind: input, shape index: {}]   ;;  %s503_s4 = inlined_call_operand.vmem [shape: f32[1,128], index: 4, kind: input, shape index: {}]   ;;  %s504_s5 = inlined_call_operand.hbm [shape: f32[2,128], index: 5, kind: output, shape index: {}]  }
   0x1   :  { %11 = vsyncpa [#allocation6], 0 }
   0x2   :  { %12 = vsyncpa [#allocation4], 0  ;;  %s413_s18 = smov [#allocation2]   ;;  %s341_s22 = scalar_lea.hbm %s499_s0, 128 }
   0x3   :  { %s18_s19 = sshll.u32 %s413_s18, 4  ;;  %p342_p0 = scmp.ne.s32.totalorder %s499_s0, %s341_s22  ;;  %s19_s19 = int_to_ptr.vmem [resolvable:$true] %s18_s19 }
   0x4   :  { %p345_p1 = scmp.lt.u32.totalorder %s341_s22, %s499_s0 }
   0x6   :  { %p347_p2 = pnand %p345_p1, %p342_p0 }
   0x8   :  { %350 = shalt.err (!%p347_p2)
}
   0x9   :  { %s351_s27 = scalar_lea.vmem %s19_s19, 128  ;;  %p356_p4 = scmp.lt.s32.totalorder %s19_s19, %s19_s19 }
   0xa   :  { %p352_p3 = scmp.ne.s32.totalorder %s19_s19, %s351_s27  ;;  %p357_p5 = scmp.lt.s32.totalorder %s351_s27, %s351_s27 }
   0xc   :  { %p358_p6 = por %p357_p5, %p356_p4 }
   0xe   :  { %p359_p7 = pnand %p358_p6, %p352_p3 }
  0x10   :  { %362 = shalt.err (!%p359_p7)
}
  0x11   :  { %s414_s28 = smov 64   ;;  %s415_s29 = smov 4  }
  0x12   :  { %24 = dma.hbm_to_vmem [thread:$0]  %s499_s0, 128, %s19_s19, [#allocation3], %s414_s28, %s414_s28, %s415_s29  }
  0x13   :  { %s416_s7 = smov [#allocation5]   ;;  %s363_s11 = scalar_lea.hbm %s502_s3, 256 }
  0x14   :  { %s34_s8 = sshll.u32 %s416_s7, 4  ;;  %p364_p8 = scmp.ne.s32.totalorder %s502_s3, %s363_s11  ;;  %s35_s8 = int_to_ptr.vmem [resolvable:$true] %s34_s8 }
  0x15   :  { %p367_p9 = scmp.lt.u32.totalorder %s363_s11, %s502_s3 }
  0x17   :  { %p369_p10 = pnand %p367_p9, %p364_p8 }
  0x19   :  { %372 = shalt.err (!%p369_p10)
}
  0x1a   :  { %s373_s16 = scalar_lea.vmem %s35_s8, 256  ;;  %p378_p12 = scmp.lt.s32.totalorder %s35_s8, %s35_s8 }
  0x1b   :  { %p374_p11 = scmp.ne.s32.totalorder %s35_s8, %s373_s16  ;;  %p379_p13 = scmp.lt.s32.totalorder %s373_s16, %s373_s16 }
  0x1d   :  { %p380_p0 = por %p379_p13, %p378_p12 }
  0x1f   :  { %p381_p1 = pnand %p380_p0, %p374_p11 }
  0x21   :  { %384 = shalt.err (!%p381_p1)
}
  0x22   :  { %40 = dma.hbm_to_vmem [thread:$0]  %s502_s3, 256, %s35_s8, [#allocation6], %s414_s28, %s414_s28, %s415_s29  }
  0x23   :  { %407 = dma.done.wait [#allocation3], 128  }
  0x24   :  { %408 = vsyncadd [#allocation3], 4294967168 }
  0x25   :  { %409 = dma.done.wait [#allocation6], 256  }
  0x26   :  { %410 = vsyncadd [#allocation6], 4294967040  ;;  %v417_v0 = vmov 0.0   ;;  %vm418_vm0 = vmmov 0   ;;  %vm57_vm1 = vcmask 1043456   ;;  %vm53_vm2 = vcmask 64512  }
  0x27   :  { %309 = vmatprep.subr.bf16.mxu0 %v417_v0  ;;  %315 = vmatprep.subr.bf16.mxu1 %v417_v0  ;;  %v51_v1 = vld [vmem:[#allocation2] sm:$0xf]  ;;  %v52_v2 = vld [vmem:[#allocation2 + $0x4] sm:$0xf]  ;;  %v419_v5 = vmov 1065369472  }
  0x28   :  { %311 = vmatprep.mubr.msk.bf16.mxu0 %vm418_vm0, %v417_v0  ;;  %317 = vmatprep.mubr.msk.bf16.mxu1 %vm418_vm0, %v417_v0  ;;  %v59_v3 = vsel %vm57_vm1, %v51_v1, 0  ;;  %v102_v4 = vsel %vm57_vm1, %v52_v2, 0  ;;  %vm149_vm3 = vcmask 1041409   ;;  %vm152_vm4 = vcmask 254976   ;;  %v337_v29 = vld [vmem:[#allocation5] sm:$0xff]   ;;  %v338_v30 = vld [vmem:[#allocation5 + $0x8] sm:$0xff]  }
  0x29   :  { %310 = vmatpush3.bf16.msra.mxu0 %v59_v3  ;;  %316 = vmatpush3.bf16.msra.mxu1 %v102_v4  ;;  %v296_v35 = vld [vmem:[%s500_s1] ss:$0 sm:$0xff]  ;;  %vm233_vm5 = vcmask 261120  }
  0x2a   :  { %321 = vmatprep.subr.bf16.mxu0 %v417_v0  ;;  %v297_v38 = vld [vmem:[%s501_s2] ss:$0 sm:$0xff]  ;;  %s420_s2 = smov [#allocation7]  }
  0x2b   :  { %v298_v51 = vld [vmem:[%s503_s4] ss:$0 sm:$0xff]  ;;  %s284_s22 = sshll.u32 %s420_s2, 4  ;;  %s285_s22 = int_to_ptr.vmem [resolvable:$true] %s284_s22 }
  0x2c   :  { %312 = vmatmul.mubr.msk.bf16.vlgmr.msra.gmra.mrb[0].mxu0 %vm53_vm2, %v419_v5  ;;  %318 = vmatmul.mubr.msk.bf16.vlgmr.msra.gmra.mrb[0].mxu1 %vm53_vm2, %v419_v5  ;;  %s385_s23 = scalar_lea.vmem %s285_s22, 32  ;;  %p390_p3 = scmp.lt.s32.totalorder %s285_s22, %s285_s22 }
  0x2d   :  { %325 = vmatprep.mubr.msk.bf16.mxu0 %vm418_vm0, %v417_v0  ;;  %322 = vmatpush3.bf16.msra.mxu0 %v337_v29  ;;  %p386_p2 = scmp.ne.s32.totalorder %s285_s22, %s385_s23  ;;  %p391_p4 = scmp.lt.s32.totalorder %s385_s23, %s385_s23 }
  0x2e   :  { %323 = vmatprep.subr.bf16.mxu0 %v417_v0 }
  0x2f   :  { %p392_p5 = por %p391_p4, %p390_p3 }
  0x31   :  { %324 = vmatpush3.bf16.msra.mxu0 %v338_v30  ;;  %p393_p6 = pnand %p392_p5, %p386_p2 }
  0xff   :  { %v95_v6 = vpop.f32.mrb[0].mxu0  ;;  %v138_v7 = vpop.f32.mrb[0].mxu1 }
 0x100   :  { %v144_v8 = vmul.f32 0.125, %v95_v6  ;;  %v145_v9 = vmul.f32 0.125, %v138_v7  ;;  %v313_v10 = vpop.f32.mrb[1].mxu0  ;;  %v319_v11 = vpop.f32.mrb[1].mxu1 }
 0x101   :  { %v98_v12 = vpop.f32.mrb[2].mxu0  ;;  %v141_v13 = vpop.f32.mrb[2].mxu1 }
 0x102   :  { %v148_v14 = vrot.slane %v145_v9, 7  ;;  %v314_v15 = vpop.f32.mrb[3].mxu0  ;;  %v320_v16 = vpop.f32.mrb[3].mxu1 }
 0x104   :  { %v150_v17 = vsel %vm149_vm3, %v148_v14, %v144_v8 }
 0x105   :  { %v153_v18 = vsel %vm152_vm4, %v150_v17, 0.0 }
 0x106   :  { %154 = vadd.xlane.f32.xlu0 %v153_v18 }
 0x193   :  { %v155_v19 = vpop.xlane.xlu0 %154 }
 0x194   :  { %v157_v20 = vmul.f32 0.03125, %v155_v19 }
 0x196   :  { %v159_v21 = vrot.slane %v157_v20, 1  ;;  %v162_v22 = vsub.f32 %v144_v8, %v157_v20 }
 0x198   :  { %v163_v23 = vsub.f32 %v145_v9, %v159_v21  ;;  %v164_v25 = vmul.f32 %v162_v22, %v162_v22 }
 0x19a   :  { %v165_v24 = vmul.f32 %v163_v23, %v163_v23 }
 0x19c   :  { %v168_v26 = vrot.slane %v165_v24, 7 }
 0x19e   :  { %v169_v27 = vsel %vm149_vm3, %v168_v26, %v164_v25 }
 0x19f   :  { %v171_v28 = vsel %vm152_vm4, %v169_v27, 0.0 }
 0x1a0   :  { %172 = vadd.xlane.f32.xlu0 %v171_v28 }
 0x22d   :  { %v173_v31 = vpop.xlane.xlu0 %172 }
 0x22e   :  { %v174_v32 = vmul.f32 0.03125, %v173_v31 }
 0x230   :  { %v175_v33 = vadd.f32 1e-05, %v174_v32 }
 0x232   :  { %339 = vrsqrt.f32 %v175_v33 }
 0x23c   :  { %v340_v34 = vpop.eup %339 }
 0x23d   :  { %v178_v36 = vrot.slane %v340_v34, 1  ;;  %v181_v37 = vmul.f32 %v340_v34, %v162_v22 }
 0x23f   :  { %v182_v39 = vmul.f32 %v178_v36, %v163_v23  ;;  %v190_v40 = vmul.f32 %v296_v35, %v181_v37 }
 0x241   :  { %v191_v41 = vmul.f32 %v296_v35, %v182_v39  ;;  %v199_v42 = vadd.f32 %v297_v38, %v190_v40 }
 0x243   :  { %v200_v43 = vadd.f32 %v297_v38, %v191_v41  ;;  %v201_v44 = vpack.c.bf16 %v199_v42, %v199_v42 }
 0x245   :  { %v202_v45 = vpack.c.bf16 %v200_v43, %v200_v43  ;;  %v216_v47 = vunpack.c.l.b16 %v201_v44 }
 0x247   :  { %v217_v46 = vunpack.c.l.b16 %v202_v45 }
 0x249   :  { %v218_v48 = vrot.slane %v217_v46, 7 }
 0x24b   :  { %v219_v49 = vsel %vm149_vm3, %v218_v48, %v216_v47 }
 0x24c   :  { %v220_v50 = vpack.c.b16 %v219_v49, %v219_v49 }
 0x24e   :  { %326 = vmatmul.mubr.msk.bf16.vlgmr.msra.gmra.mrb[4].mxu0 %vm233_vm5, %v220_v50 }
 0x321   :  { %v271_v52 = vpop.f32.mrb[4].mxu0 }
 0x322   :  { %v272_v53 = vadd.f32 %v298_v51, %v271_v52  ;;  %v327_v54 = vpop.f32.mrb[5].mxu0 }
 0x323   :  { %v274_v55 = vpop.f32.mrb[6].mxu0 }
 0x324   :  { %277 = vst [vmem:[#allocation7] sm:$0x3] %v272_v53  ;;  %v328_v56 = vpop.f32.mrb[7].mxu0 }
 0x325   :  { %396 = shalt.err (!%p393_p6)
}
 0x326   :  { %s397_s4 = scalar_lea.hbm %s504_s5, 32 }
 0x327   :  { %p398_p7 = scmp.ne.s32.totalorder %s504_s5, %s397_s4  ;;  %p401_p8 = scmp.lt.u32.totalorder %s397_s4, %s504_s5 }
 0x329   :  { %p403_p9 = pnand %p401_p8, %p398_p7 }
 0x32b   :  { %406 = shalt.err (!%p403_p9)
}
 0x32c   :  { %287 = dma.vmem_to_hbm [thread:$0]  %s285_s22, 32, %s504_s5, [#allocation4]  }
 0x32d   :  { %411 = dma.done.wait [#allocation4], 32  }
 0x32e   :  { %412 = vsyncadd [#allocation4], 4294967264 }
 0x32f   :  { %291 = vsyncpa [#allocation3], 1 }
 0x330   :  { %292 = vsyncpa [#allocation6], 1 }
 0x331   :  { %293 = vsyncpa [#allocation4], 1 }

</bundles_post_ra>
